<compile_context>
chip_gen: v6e
topology: v6e:2x2x1
jax: 0.10.0
libtpu: 0.0.40
codegen_flags: <defaults>
</compile_context>

<pallas_src>
import functools

import jax
import jax.numpy as jnp
from jax import lax
from jax.experimental import pallas as pl
from jax.experimental.pallas import tpu as pltpu

EPS = 1e-12


def _bert_output_kernel(x_ref, w_ref, b_ref, res_ref, gamma_ref, beta_ref,
                        o_ref, acc_ref, *, compute_dtype):
    # x_ref:   (tm, tk)  intermediate activations tile
    # w_ref:   (H, tk)   dense weight, PyTorch (out, in) layout, K-slab
    # b_ref:   (1, H)    dense bias
    # res_ref: (tm, H)   input_tensor (residual) tile
    # gamma/beta: (1, H) LayerNorm params
    # acc_ref: (tm, H)   f32 accumulator (resident across the K grid axis)
    k = pl.program_id(1)

    @pl.when(k == 0)
    def _():
        acc_ref[...] = jnp.zeros_like(acc_ref)

    x = x_ref[...]
    w = w_ref[...]
    if compute_dtype is not None:
        x = x.astype(compute_dtype)
        w = w.astype(compute_dtype)
    # y = x @ W^T : contract the K axis of both operands (no host transpose).
    acc_ref[...] += lax.dot_general(
        x, w,
        dimension_numbers=(((1,), (1,)), ((), ())),
        preferred_element_type=jnp.float32)

    @pl.when(k == pl.num_programs(1) - 1)
    def _():
        # TODO(synk): dropout is identity in eval/inference mode (no RNG mask applied).
        z = (acc_ref[...]
             + b_ref[...].astype(jnp.float32)
             + res_ref[...].astype(jnp.float32))
        # LayerNorm (TF style, epsilon inside the sqrt), reduce over last dim in f32.
        u = jnp.mean(z, axis=-1, keepdims=True)
        d = z - u
        s = jnp.mean(d * d, axis=-1, keepdims=True)
        normed = d * lax.rsqrt(s + EPS)
        o_ref[...] = (gamma_ref[...].astype(jnp.float32) * normed
                      + beta_ref[...].astype(jnp.float32)).astype(o_ref.dtype)


def _largest_tile(n, target, multiple):
    """Largest divisor of n that is <= target and a multiple of `multiple`."""
    d = (min(target, n) // multiple) * multiple
    while d >= multiple:
        if n % d == 0:
            return d
        d -= multiple
    return None


def bert_output(hidden_states, input_tensor, weight, bias, gamma, beta,
                *, tm=None, tk=None, compute_dtype=None):
    """BERTOutput forward.

    hidden_states: (B, S, K)  intermediate activations (K = intermediate_size)
    input_tensor:  (B, S, H)  residual
    weight:        (H, K)     nn.Linear weight, PyTorch (out, in) layout
    bias, gamma, beta: (H,)
    """
    B, S, K = hidden_states.shape
    H = input_tensor.shape[-1]
    M = B * S

    # Big row tiles keep the MXU busy and amortize per-grid-step overhead;
    # K is tiled so the (H, K) weight stays streamable within VMEM.
    if tm is None:
        tm = _largest_tile(M, 512, 8) or M
    if tk is None:
        tk = _largest_tile(K, 512, 128) or K
    assert M % tm == 0 and K % tk == 0

    x2 = hidden_states.reshape(M, K)
    r2 = input_tensor.reshape(M, H)
    b2 = bias.reshape(1, H)
    g2 = gamma.reshape(1, H)
    be2 = beta.reshape(1, H)

    in_itemsize = jnp.dtype(compute_dtype or hidden_states.dtype).itemsize
    out_itemsize = jnp.dtype(hidden_states.dtype).itemsize
    # Double-buffered input tiles + output tile + resident f32 accumulator, 1.5x margin.
    vmem_need = 2 * (tm * tk * in_itemsize          # x tile
                     + H * tk * in_itemsize         # weight slab
                     + tm * H * out_itemsize        # residual tile
                     + tm * H * out_itemsize        # output tile
                     + 3 * H * out_itemsize)        # bias / gamma / beta
    vmem_need += tm * H * 4                         # accumulator scratch
    vmem_limit = int(min(max(int(vmem_need * 1.5) + (1 << 20), 16 << 20), 96 << 20))

    kernel = functools.partial(_bert_output_kernel, compute_dtype=compute_dtype)

    out = pl.pallas_call(
        kernel,
        out_shape=jax.ShapeDtypeStruct((M, H), hidden_states.dtype),
        grid_spec=pltpu.PrefetchScalarGridSpec(
            num_scalar_prefetch=0,
            grid=(M // tm, K // tk),
            in_specs=[
                pl.BlockSpec((tm, tk), lambda i, k: (i, k)),   # activations
                pl.BlockSpec((H, tk), lambda i, k: (0, k)),    # weight (out, in)
                pl.BlockSpec((1, H), lambda i, k: (0, 0)),     # bias
                pl.BlockSpec((tm, H), lambda i, k: (i, 0)),    # residual
                pl.BlockSpec((1, H), lambda i, k: (0, 0)),     # gamma
                pl.BlockSpec((1, H), lambda i, k: (0, 0)),     # beta
            ],
            out_specs=pl.BlockSpec((tm, H), lambda i, k: (i, 0)),
            scratch_shapes=[pltpu.VMEM((tm, H), jnp.float32)],
        ),
        compiler_params=pltpu.CompilerParams(
            dimension_semantics=("parallel", "arbitrary"),
            vmem_limit_bytes=vmem_limit,
        ),
    )(x2, weight, b2, r2, g2, be2)
    return out.reshape(B, S, H)


def reference(hidden_states, input_tensor, weight, bias, gamma, beta):
    y = jnp.einsum("bsk,hk->bsh", hidden_states, weight) + bias
    z = y + input_tensor
    u = jnp.mean(z, axis=-1, keepdims=True)
    s = jnp.mean((z - u) ** 2, axis=-1, keepdims=True)
    x = (z - u) / jnp.sqrt(s + EPS)
    return gamma * x + beta


if __name__ == "__main__":
    B, S, H = 2, 8, 32
    K = 4 * H  # intermediate_size
    key = jax.random.PRNGKey(0)
    k1, k2, k3, k4 = jax.random.split(key, 4)

    hidden_states = jax.random.normal(k1, (B, S, K), dtype=jnp.float32)
    input_tensor = jax.random.normal(k2, (B, S, H), dtype=jnp.float32)
    # nn.Linear(intermediate_size, hidden_size): weight (out, in) = (H, K)
    weight = jax.random.normal(k3, (H, K), dtype=jnp.float32) * 0.02
    bias = jax.random.normal(k4, (H,), dtype=jnp.float32) * 0.02
    # BERTLayerNorm: gamma ones, beta zeros
    gamma = jnp.ones((H,), dtype=jnp.float32)
    beta = jnp.zeros((H,), dtype=jnp.float32)

    out = bert_output(hidden_states, input_tensor, weight, bias, gamma, beta)
    out = jax.block_until_ready(out)

    ref = reference(hidden_states, input_tensor, weight, bias, gamma, beta)
    assert out.shape == (B, S, H)
    assert jnp.allclose(out, ref, atol=1e-5, rtol=1e-5), float(jnp.max(jnp.abs(out - ref)))
    print("KERNEL_OK")
</pallas_src>

<mosaic_0001>
module attributes {stable_mosaic.version = 11 : i64} {
  func.func @_bert_output_kernel(%arg0: i32, %arg1: i32, %arg2: memref<16x128xf32, #tpu.memory_space<vmem>>, %arg3: memref<32x128xf32, #tpu.memory_space<vmem>>, %arg4: memref<1x32xf32, #tpu.memory_space<vmem>>, %arg5: memref<16x32xf32, #tpu.memory_space<vmem>>, %arg6: memref<1x32xf32, #tpu.memory_space<vmem>>, %arg7: memref<1x32xf32, #tpu.memory_space<vmem>>, %arg8: memref<16x32xf32, #tpu.memory_space<vmem>>, %arg9: memref<16x32xf32, #tpu.memory_space<vmem>>) attributes {dimension_semantics = [#tpu.dimension_semantics<parallel>, #tpu.dimension_semantics<arbitrary>], iteration_bounds = array<i64: 1, 1>, scalar_prefetch = 0 : i64, scratch_operands = 1 : i64, tpu.core_type = #tpu.core_type<tc>, window_params = [{transform_indices = @transform_0, window_bounds = array<i64: 16, 128>}, {transform_indices = @transform_1, window_bounds = array<i64: 32, 128>}, {pipeline_mode = #tpu.pipeline_mode<synchronous>, transform_indices = @transform_2, window_bounds = array<i64: 1, 32>}, {transform_indices = @transform_3, window_bounds = array<i64: 16, 32>}, {pipeline_mode = #tpu.pipeline_mode<synchronous>, transform_indices = @transform_4, window_bounds = array<i64: 1, 32>}, {pipeline_mode = #tpu.pipeline_mode<synchronous>, transform_indices = @transform_5, window_bounds = array<i64: 1, 32>}, {transform_indices = @transform_6, window_bounds = array<i64: 16, 32>}]} {
    %c0_i32 = arith.constant 0 : i32
    %0 = arith.cmpi eq, %arg1, %c0_i32 : i32
    %1 = arith.extui %0 : i1 to i32
    %c0_i32_0 = arith.constant 0 : i32
    %2 = arith.cmpi ne, %1, %c0_i32_0 : i32
    scf.if %2 {
      %cst_10 = arith.constant 0.000000e+00 : f32
      %12 = vector.broadcast %cst_10 : f32 to vector<16x32xf32>
      %c0_11 = arith.constant 0 : index
      %c0_12 = arith.constant 0 : index
      %13 = vector.load %arg9[%c0_11, %c0_12] : memref<16x32xf32, #tpu.memory_space<vmem>>, vector<16x32xf32>
      tpu.vector_store %arg9[%c0_11, %c0_12], %12 {strides = array<i32>} : memref<16x32xf32, #tpu.memory_space<vmem>>, vector<16x32xf32>,
    } else {
    }
    %c0 = arith.constant 0 : index
    %c0_1 = arith.constant 0 : index
    %3 = vector.load %arg2[%c0, %c0_1] : memref<16x128xf32, #tpu.memory_space<vmem>>, vector<16x128xf32>
    %c0_2 = arith.constant 0 : index
    %c0_3 = arith.constant 0 : index
    %4 = vector.load %arg3[%c0_2, %c0_3] : memref<32x128xf32, #tpu.memory_space<vmem>>, vector<32x128xf32>
    %c0_4 = arith.constant 0 : index
    %c0_5 = arith.constant 0 : index
    %5 = vector.load %arg9[%c0_4, %c0_5] : memref<16x32xf32, #tpu.memory_space<vmem>>, vector<16x32xf32>
    %cst = arith.constant dense<0.000000e+00> : vector<16x32xf32>
    %6 = tpu.matmul %3, %4, %cst {dimension_numbers = #tpu.dot_dimension_numbers<[1], [1], [0], [0], [0, 0, 1, 0], [], []>} : vector<16x128xf32>, vector<32x128xf32>, vector<16x32xf32> -> vector<16x32xf32>
    %7 = arith.addf %5, %6 : vector<16x32xf32>
    %c0_6 = arith.constant 0 : index
    %c0_7 = arith.constant 0 : index
    %8 = vector.load %arg9[%c0_6, %c0_7] : memref<16x32xf32, #tpu.memory_space<vmem>>, vector<16x32xf32>
    tpu.vector_store %arg9[%c0_6, %c0_7], %7 {strides = array<i32>} : memref<16x32xf32, #tpu.memory_space<vmem>>, vector<16x32xf32>,
    %c0_i32_8 = arith.constant 0 : i32
    %9 = arith.cmpi eq, %arg1, %c0_i32_8 : i32
    %10 = arith.extui %9 : i1 to i32
    %c0_i32_9 = arith.constant 0 : i32
    %11 = arith.cmpi ne, %10, %c0_i32_9 : i32
    scf.if %11 {
      %c0_10 = arith.constant 0 : index
      %c0_11 = arith.constant 0 : index
      %12 = vector.load %arg9[%c0_10, %c0_11] : memref<16x32xf32, #tpu.memory_space<vmem>>, vector<16x32xf32>
      %c0_12 = arith.constant 0 : index
      %c0_13 = arith.constant 0 : index
      %13 = vector.load %arg4[%c0_12, %c0_13] : memref<1x32xf32, #tpu.memory_space<vmem>>, vector<1x32xf32>
      %14 = vector.broadcast %13 : vector<1x32xf32> to vector<16x32xf32>
      %15 = arith.addf %12, %14 : vector<16x32xf32>
      %c0_14 = arith.constant 0 : index
      %c0_15 = arith.constant 0 : index
      %16 = vector.load %arg5[%c0_14, %c0_15] : memref<16x32xf32, #tpu.memory_space<vmem>>, vector<16x32xf32>
      %17 = arith.addf %15, %16 : vector<16x32xf32>
      %cst_16 = arith.constant dense<0.000000e+00> : vector<16xf32>
      %18 = vector.multi_reduction <add>, %17, %cst_16 [1] : vector<16x32xf32> to vector<16xf32>
      %19 = vector.shape_cast %18 : vector<16xf32> to vector<16x1xf32>
      %cst_17 = arith.constant 3.200000e+01 : f32
      %20 = vector.broadcast %cst_17 : f32 to vector<16x1xf32>
      %21 = arith.divf %19, %20 : vector<16x1xf32>
      %22 = vector.broadcast %21 : vector<16x1xf32> to vector<16x32xf32>
      %23 = arith.subf %17, %22 : vector<16x32xf32>
      %24 = arith.mulf %23, %23 : vector<16x32xf32>
      %cst_18 = arith.constant dense<0.000000e+00> : vector<16xf32>
      %25 = vector.multi_reduction <add>, %24, %cst_18 [1] : vector<16x32xf32> to vector<16xf32>
      %26 = vector.shape_cast %25 : vector<16xf32> to vector<16x1xf32>
      %cst_19 = arith.constant 3.200000e+01 : f32
      %27 = vector.broadcast %cst_19 : f32 to vector<16x1xf32>
      %28 = arith.divf %26, %27 : vector<16x1xf32>
      %cst_20 = arith.constant 9.99999996E-13 : f32
      %29 = vector.broadcast %cst_20 : f32 to vector<16x1xf32>
      %30 = arith.addf %28, %29 : vector<16x1xf32>
      %31 = math.rsqrt %30 : vector<16x1xf32>
      %32 = vector.broadcast %31 : vector<16x1xf32> to vector<16x32xf32>
      %33 = arith.mulf %23, %32 : vector<16x32xf32>
      %c0_21 = arith.constant 0 : index
      %c0_22 = arith.constant 0 : index
      %34 = vector.load %arg6[%c0_21, %c0_22] : memref<1x32xf32, #tpu.memory_space<vmem>>, vector<1x32xf32>
      %35 = vector.broadcast %34 : vector<1x32xf32> to vector<16x32xf32>
      %36 = arith.mulf %35, %33 : vector<16x32xf32>
      %c0_23 = arith.constant 0 : index
      %c0_24 = arith.constant 0 : index
      %37 = vector.load %arg7[%c0_23, %c0_24] : memref<1x32xf32, #tpu.memory_space<vmem>>, vector<1x32xf32>
      %38 = vector.broadcast %37 : vector<1x32xf32> to vector<16x32xf32>
      %39 = arith.addf %36, %38 : vector<16x32xf32>
      %c0_25 = arith.constant 0 : index
      %c0_26 = arith.constant 0 : index
      %40 = vector.load %arg8[%c0_25, %c0_26] : memref<16x32xf32, #tpu.memory_space<vmem>>, vector<16x32xf32>
      tpu.vector_store %arg8[%c0_25, %c0_26], %39 {strides = array<i32>} : memref<16x32xf32, #tpu.memory_space<vmem>>, vector<16x32xf32>,
    } else {
    }
    return
  }
  func.func @transform_0(%arg0: i32, %arg1: i32) -> (i32, i32) {
    %c0_i32 = arith.constant 0 : i32
    return %arg0, %arg1 : i32, i32
  }
  func.func @transform_1(%arg0: i32, %arg1: i32) -> (i32, i32) {
    %c0_i32 = arith.constant 0 : i32
    %c0_i32_0 = arith.constant 0 : i32
    return %c0_i32, %arg1 : i32, i32
  }
  func.func @transform_2(%arg0: i32, %arg1: i32) -> (i32, i32) {
    %c0_i32 = arith.constant 0 : i32
    %c0_i32_0 = arith.constant 0 : i32
    %c0_i32_1 = arith.constant 0 : i32
    return %c0_i32, %c0_i32_0 : i32, i32
  }
  func.func @transform_3(%arg0: i32, %arg1: i32) -> (i32, i32) {
    %c0_i32 = arith.constant 0 : i32
    %c0_i32_0 = arith.constant 0 : i32
    return %arg0, %c0_i32 : i32, i32
  }
  func.func @transform_4(%arg0: i32, %arg1: i32) -> (i32, i32) {
    %c0_i32 = arith.constant 0 : i32
    %c0_i32_0 = arith.constant 0 : i32
    %c0_i32_1 = arith.constant 0 : i32
    return %c0_i32, %c0_i32_0 : i32, i32
  }
  func.func @transform_5(%arg0: i32, %arg1: i32) -> (i32, i32) {
    %c0_i32 = arith.constant 0 : i32
    %c0_i32_0 = arith.constant 0 : i32
    %c0_i32_1 = arith.constant 0 : i32
    return %c0_i32, %c0_i32_0 : i32, i32
  }
  func.func @transform_6(%arg0: i32, %arg1: i32) -> (i32, i32) {
    %c0_i32 = arith.constant 0 : i32
    %c0_i32_0 = arith.constant 0 : i32
    return %arg0, %c0_i32 : i32, i32
  }
}

</mosaic_0001>

<bundles_post_ra>
// kernel: tpu_custom_call.1
= control target key start
LH: loop header
LB: loop body
LE: loop exit
PB: predicated region body
PF: predicated region fallthrough
CT: control target
= control target key end

     0   :  { %11 = vsyncpa [#allocation4], 0  ;;  %s445_s0 = inlined_call_operand.hbm [shape: f32[16,128], index: 0, kind: input, shape index: {}]   ;;  %s446_s1 = inlined_call_operand.hbm [shape: f32[32,128], index: 1, kind: input, shape index: {}]   ;;  %s447_s2 = inlined_call_operand.vmem [shape: f32[1,32], index: 2, kind: input, shape index: {}]   ;;  %s448_s3 = inlined_call_operand.hbm [shape: f32[16,32], index: 3, kind: input, shape index: {}]   ;;  %s449_s4 = inlined_call_operand.vmem [shape: f32[1,32], index: 4, kind: input, shape index: {}]   ;;  %s450_s5 = inlined_call_operand.vmem [shape: f32[1,32], index: 5, kind: input, shape index: {}]   ;;  %s451_s6 = inlined_call_operand.hbm [shape: f32[16,32], index: 6, kind: output, shape index: {}]  }
   0x1   :  { %12 = vsyncpa [#allocation7], 0 }
   0x2   :  { %13 = vsyncpa [#allocation5], 0  ;;  %s360_s21 = smov [#allocation6]   ;;  %s361_s23 = smov [#allocation3]  }
   0x3   :  { %s31_s22 = sshll.u32 %s360_s21, 4  ;;  %s19_s24 = sshll.u32 %s361_s23, 4  ;;  %s32_s22 = int_to_ptr.vmem [resolvable:$true] %s31_s22  ;;  %s20_s24 = int_to_ptr.vmem [resolvable:$true] %s19_s24 }
   0x4   :  { %s282_s25 = scalar_lea.vmem %s32_s22, 512  ;;  %p287_p1 = scmp.lt.s32.totalorder %s32_s22, %s32_s22 }
   0x5   :  { %p283_p0 = scmp.ne.s32.totalorder %s32_s22, %s282_s25  ;;  %p288_p2 = scmp.lt.s32.totalorder %s282_s25, %s282_s25 }
   0x7   :  { %p289_p3 = por %p288_p2, %p287_p1 }
   0x9   :  { %p290_p4 = pnand %p289_p3, %p283_p0 }
   0xb   :  { %293 = shalt.err (!%p290_p4)
}
   0xc   :  { %s362_s26 = smov 128   ;;  %s363_s27 = smov 8  }
   0xd   :  { %37 = dma.hbm_to_vmem [thread:$0]  %s446_s1, 512, %s32_s22, [#allocation7], %s362_s26, %s362_s26, %s363_s27  }
   0xe   :  { %s302_s30 = scalar_lea.vmem %s20_s24, 256  ;;  %p307_p6 = scmp.lt.s32.totalorder %s20_s24, %s20_s24 }
   0xf   :  { %p303_p5 = scmp.ne.s32.totalorder %s20_s24, %s302_s30  ;;  %p308_p7 = scmp.lt.s32.totalorder %s302_s30, %s302_s30 }
  0x11   :  { %p309_p8 = por %p308_p7, %p307_p6 }
  0x13   :  { %p310_p9 = pnand %p309_p8, %p303_p5 }
  0x15   :  { %313 = shalt.err (!%p310_p9)
}
  0x16   :  { %25 = dma.hbm_to_vmem [thread:$0]  %s445_s0, 256, %s20_s24, [#allocation4], %s362_s26, %s362_s26, %s363_s27  }
  0x17   :  { %s364_s9 = smov [#allocation8]  }
  0x18   :  { %s45_s10 = sshll.u32 %s364_s9, 4  ;;  %s46_s10 = int_to_ptr.vmem [resolvable:$true] %s45_s10 }
  0x19   :  { %s322_s11 = scalar_lea.vmem %s46_s10, 256  ;;  %p327_p11 = scmp.lt.s32.totalorder %s46_s10, %s46_s10 }
  0x1a   :  { %p323_p10 = scmp.ne.s32.totalorder %s46_s10, %s322_s11  ;;  %p328_p12 = scmp.lt.s32.totalorder %s322_s11, %s322_s11 }
  0x1c   :  { %p329_p13 = por %p328_p12, %p327_p11 }
  0x1e   :  { %p330_p0 = pnand %p329_p13, %p323_p10 }
  0x20   :  { %333 = shalt.err (!%p330_p0)
}
  0x21   :  { %51 = dma.hbm_to_vmem [thread:$0]  %s448_s3, 256, %s46_s10, [#allocation7], %s362_s26, %s362_s26, %s363_s27  }
  0x22   :  { %354 = dma.done.wait [#allocation4], 256  }
  0x23   :  { %355 = vsyncadd [#allocation4], 4294967040 }
  0x24   :  { %356 = dma.done.wait [#allocation7], 768  }
  0x25   :  { %357 = vsyncadd [#allocation7], 4294966528  ;;  %vm69_vm0 = vcmask 261120   ;;  %v365_v0 = vmov 0.0   ;;  %v77_v1 = vld [vmem:[#allocation6 + $0x18] sm:$0xff]  ;;  %v76_v2 = vld [vmem:[#allocation6 + $0x10] sm:$0xff] }
  0x26   :  { %71 = vst.msk [vmem:[#allocation2 + $0x8] sm:$0xff] %vm69_vm0, %v365_v0  ;;  %70 = vst.msk [vmem:[#allocation2] sm:$0xff] %vm69_vm0, %v365_v0  ;;  %252 = vmatprep.subr.mxu0 %v77_v1  ;;  %v72_v3 = vld [vmem:[#allocation3] sm:$0xff]  ;;  %v75_v4 = vld [vmem:[#allocation6 + $0x8] sm:$0xff]  ;;  %s366_s16 = smov [#allocation9]  }
  0x27   :  { %253 = vmatpush3.xpose.msra.mxu0 %v77_v1  ;;  %260 = vmatprep.mubr.f32.mxu0 %v72_v3  ;;  %v74_v5 = vld [vmem:[#allocation6] sm:$0xff]  ;;  %v73_v6 = vld [vmem:[#allocation3 + $0x8] sm:$0xff]  ;;  %v175_v19 = vld [vmem:[#allocation8 + $0x8] sm:$0xff]  ;;  %s230_s17 = sshll.u32 %s366_s16, 4  ;;  %s231_s17 = int_to_ptr.vmem [resolvable:$true] %s230_s17 }
  0x28   :  { %254 = vmatprep.subr.mxu0 %v76_v2  ;;  %v243_v13 = vld [vmem:[%s447_s2] ss:$0 sm:$0xff]  ;;  %s334_s18 = scalar_lea.vmem %s231_s17, 256  ;;  %p339_p2 = scmp.lt.s32.totalorder %s231_s17, %s231_s17 }
  0x29   :  { %v174_v16 = vld [vmem:[#allocation8] sm:$0xff]  ;;  %p335_p1 = scmp.ne.s32.totalorder %s231_s17, %s334_s18  ;;  %p340_p3 = scmp.lt.s32.totalorder %s334_s18, %s334_s18 }
  0x2a   :  { %v244_v41 = vld [vmem:[%s449_s4] ss:$0 sm:$0xff] }
  0x2b   :  { %255 = vmatpush3.xpose.msra.mxu0 %v76_v2  ;;  %v245_v43 = vld [vmem:[%s450_s5] ss:$0 sm:$0xff]  ;;  %p341_p4 = por %p340_p3, %p339_p2 }
  0x2c   :  { %256 = vmatprep.subr.mxu0 %v75_v4 }
  0x2d   :  { %v79_v7 = vld [vmem:[#allocation2 + $0x8] sm:$0xff]  ;;  %v78_v9 = vld [vmem:[#allocation2] sm:$0xff]  ;;  %p342_p5 = pnand %p341_p4, %p335_p1 }
  0x2f   :  { %257 = vmatpush3.xpose.msra.mxu0 %v75_v4 }
  0x30   :  { %258 = vmatprep.subr.mxu0 %v74_v5 }
  0x33   :  { %259 = vmatpush3.xpose.msra.mxu0 %v74_v5 }
  0x36   :  { %261 = vmatmul.mubr.f32.vlgmr.msra.gmra.mxu0 %v73_v6 }
  0xf6   :  { %v262_v8 = vpop.f32.mrf.mxu0 }
  0xf7   :  { %v156_v10 = vadd.f32 %v262_v8, %v79_v7 }
  0xf8   :  { %v146_v11 = vpop.f32.mrf.mxu0 }
  0xf9   :  { %159 = vst.msk [vmem:[#allocation2 + $0x8] sm:$0xff] %vm69_vm0, %v156_v10  ;;  %v155_v12 = vadd.f32 %v146_v11, %v78_v9 }
  0xfb   :  { %158 = vst.msk [vmem:[#allocation2] sm:$0xff] %vm69_vm0, %v155_v12 }
 0x100   :  { %v164_v14 = vld [vmem:[#allocation2 + $0x8] sm:$0xff] }
 0x101   :  { %v173_v18 = vadd.f32 %v243_v13, %v164_v14 }
 0x102   :  { %v163_v15 = vld [vmem:[#allocation2] sm:$0xff] }
 0x103   :  { %v172_v17 = vadd.f32 %v243_v13, %v163_v15  ;;  %v177_v22 = vadd.f32 %v175_v19, %v173_v18 }
 0x105   :  { %v176_v20 = vadd.f32 %v174_v16, %v172_v17  ;;  %v181_v23 = vsel %vm69_vm0, %v177_v22, 0.0 }
 0x107   :  { %v178_v21 = vsel %vm69_vm0, %v176_v20, 0.0 }
 0x108   :  { %179 = vadd.xlane.f32.xlu0 %v178_v21 }
 0x10c   :  { %182 = vadd.xlane.f32.xlu0 %v181_v23 }
 0x191   :  { %v180_v24 = vpop.xlane.xlu0 %179 }
 0x192   :  { %v185_v25 = vmul.f32 0.03125, %v180_v24 }
 0x194   :  { %v187_v26 = vsub.f32 %v176_v20, %v185_v25 }
 0x195   :  { %v183_v27 = vpop.xlane.xlu0 %182 }
 0x196   :  { %v186_v28 = vmul.f32 0.03125, %v183_v27  ;;  %v189_v29 = vmul.f32 %v187_v26, %v187_v26 }
 0x198   :  { %v188_v30 = vsub.f32 %v177_v22, %v186_v28  ;;  %v191_v31 = vsel %vm69_vm0, %v189_v29, 0.0 }
 0x199   :  { %192 = vadd.xlane.f32.xlu1 %v191_v31 }
 0x19a   :  { %v190_v32 = vmul.f32 %v188_v30, %v188_v30 }
 0x19c   :  { %v194_v33 = vsel %vm69_vm0, %v190_v32, 0.0 }
 0x19d   :  { %195 = vadd.xlane.f32.xlu1 %v194_v33 }
 0x222   :  { %v193_v34 = vpop.xlane.xlu1 %192 }
 0x223   :  { %v197_v35 = vmul.f32 0.03125, %v193_v34 }
 0x225   :  { %v199_v36 = vadd.f32 1e-12, %v197_v35 }
 0x226   :  { %v196_v37 = vpop.xlane.xlu1 %195 }
 0x227   :  { %270 = vrsqrt.f32 %v199_v36  ;;  %v198_v38 = vmul.f32 0.03125, %v196_v37 }
 0x229   :  { %v200_v39 = vadd.f32 1e-12, %v198_v38 }
 0x22b   :  { %272 = vrsqrt.f32 %v200_v39 }
 0x234   :  { %v271_v40 = vpop.eup %270 }
 0x235   :  { %v203_v42 = vmul.f32 %v271_v40, %v187_v26 }
 0x237   :  { %v212_v44 = vmul.f32 %v244_v41, %v203_v42 }
 0x238   :  { %v273_v45 = vpop.eup %272 }
 0x239   :  { %v204_v46 = vmul.f32 %v273_v45, %v188_v30  ;;  %v221_v47 = vadd.f32 %v245_v43, %v212_v44 }
 0x23b   :  { %v213_v48 = vmul.f32 %v244_v41, %v204_v46  ;;  %223 = vst.msk [vmem:[#allocation9] sm:$0xff] %vm69_vm0, %v221_v47 }
 0x23d   :  { %v222_v49 = vadd.f32 %v245_v43, %v213_v48 }
 0x23f   :  { %224 = vst.msk [vmem:[#allocation9 + $0x8] sm:$0xff] %vm69_vm0, %v222_v49 }
 0x240   :  { %345 = shalt.err (!%p342_p5)
}
 0x241   :  { %236 = dma.vmem_to_hbm [thread:$0]  %s231_s17, 256, %s451_s6, [#allocation5], %s362_s26, %s362_s26, %s363_s27  }
 0x242   :  { %358 = dma.done.wait [#allocation5], 256  }
 0x243   :  { %359 = vsyncadd [#allocation5], 4294967040 }
 0x244   :  { %240 = vsyncpa [#allocation4], 1 }
 0x245   :  { %241 = vsyncpa [#allocation7], 1 }
 0x246   :  { %242 = vsyncpa [#allocation5], 1 }

</bundles_post_ra>
